<compile_context>
chip_gen: v7x
topology: tpu7x:2x2x1
jax: 0.10.0
libtpu: 0.0.40
codegen_flags: <defaults>
</compile_context>

<pallas_src>
import functools
import math

import jax
import jax.numpy as jnp
from jax import lax
from jax.experimental import pallas as pl
from jax.experimental.pallas import tpu as pltpu


# ----------------------------------------------------------------------------
# Pallas kernel: one grid step = one batch chunk, channels-major (C, N) with
# N = Bc*H*W fused lanes.
#   stage 1: 1x1 conv  -> (Cb, N)  = (Cb, Cin)  @ (Cin, N)   bf16 MXU, f32 acc
#   stage 2: 3x3 conv  -> (Cb, N)  = (Cb, 9Cb)  @ (9Cb, N)   im2col in bf16
#            VMEM scratch built from 9 lane-rotated + masked taps
#   stage 3: 1x1 conv  -> (Cin, N) = (Cin, Cb)  @ (Cb, N),   residual add
# ----------------------------------------------------------------------------
def _residual_kernel(x_ref, m_ref, w1_ref, p_ref, w2_ref, w3_ref, b3_ref,
                     o_ref, col_ref, *, H, W, Cb):
    # x_ref, o_ref : (Cin, N) f32          m_ref : (8, N) f32 tap masks
    # w1_ref: (Cb, Cin) bf16   p_ref: (Cb, 4) f32 = [b1, a1, b2, a2] columns
    # w2_ref: (Cb, 9*Cb) bf16  w3_ref: (Cin, Cb) bf16   b3_ref: (Cin, 1) f32
    # col_ref: (9*Cb, N) bf16 VMEM scratch (im2col)
    N = x_ref.shape[1]
    x = x_ref[...]                                            # (Cin, N) f32

    b1 = p_ref[:, 0:1]
    a1 = p_ref[:, 1:2]
    b2 = p_ref[:, 2:3]
    a2 = p_ref[:, 3:4]

    # --- stage 1: 1x1 conv + folded BN + PReLU -----------------------------
    y1 = jnp.dot(w1_ref[...], x.astype(jnp.bfloat16),
                 preferred_element_type=jnp.float32) + b1
    y1 = jnp.where(y1 > 0, y1, a1 * y1)                       # (Cb, N) f32

    # --- stage 2: 3x3 conv (padding=1) as one fused K=9*Cb contraction -----
    # tap(dh, dw)[c, p] = y1[c, p + dh*W + dw] when the shifted position stays
    # inside the same image, else 0.  Shifts are lane rotations (XLU slot);
    # validity masks (precomputed from lane % HW in the wrapper) zero every
    # lane where the roll would cross an image / chunk boundary.
    t, k = 0, 0
    for dh in (-1, 0, 1):
        for dw in (-1, 0, 1):
            if dh == 0 and dw == 0:
                col_ref[t * Cb:(t + 1) * Cb, :] = y1.astype(jnp.bfloat16)
            else:
                shift = (-(dh * W + dw)) % N                  # non-negative
                shifted = pltpu.roll(y1, shift=shift, axis=1)
                col_ref[t * Cb:(t + 1) * Cb, :] = (
                    shifted * m_ref[k:k + 1, :]).astype(jnp.bfloat16)
                k += 1
            t += 1
    y2 = jnp.dot(w2_ref[...], col_ref[...],
                 preferred_element_type=jnp.float32) + b2
    y2 = jnp.where(y2 > 0, y2, a2 * y2)                       # (Cb, N) f32

    # --- stage 3: 1x1 conv + folded BN, residual add ------------------------
    y3 = jnp.dot(w3_ref[...], y2.astype(jnp.bfloat16),
                 preferred_element_type=jnp.float32) + b3_ref[...]
    o_ref[...] = (x + y3).astype(o_ref.dtype)                 # lane-dense vst


# ----------------------------------------------------------------------------
# Wrapper helpers
# ----------------------------------------------------------------------------
def _make_tap_masks(H, W, n_lanes):
    """(8, n_lanes) f32 validity masks for the 8 non-center taps.

    Row/col are computed from (lane % HW) so masking stays correct when the
    batch is fused into the lane dimension (no pixel leakage across images).
    """
    HW = H * W
    lane = jnp.arange(n_lanes, dtype=jnp.int32) % HW
    r = lane // W
    c = lane % W
    rows = []
    for dh in (-1, 0, 1):
        for dw in (-1, 0, 1):
            if dh == 0 and dw == 0:
                continue
            ok = ((r + dh >= 0) & (r + dh < H) & (c + dw >= 0) & (c + dw < W))
            rows.append(ok.astype(jnp.float32))
    return jnp.stack(rows, axis=0)


def _choose_batch_block(B, H, W, Cin, Cb, bytes_budget=12 << 20):
    """Largest batch chunk whose per-step VMEM footprint fits the budget.

    Budget (12 MiB) is safely inside v5e's 16 MiB default scoped VMEM and
    v7x's 32 MiB scoped / 64 MiB physical VMEM.  If the whole batch fits and
    splitting it in two still leaves >= 2048 fused lanes per step, prefer two
    steps so both v7x TensorCores get work; otherwise use one wide step
    (per-step overhead dominates at small shapes).
    """
    HW = H * W

    def fits(bc):
        n = bc * HW
        footprint = (2 * 2 * Cin * n * 4   # double-buffered in/out (f32)
                     + 8 * n * 4           # tap masks (f32)
                     + 9 * Cb * n * 2      # bf16 im2col scratch
                     + 6 * Cb * n * 4)     # live f32 intermediates headroom
        return footprint <= bytes_budget

    divisors = [d for d in range(1, B + 1) if B % d == 0 and fits(d)]
    bc = max(divisors) if divisors else 1
    if bc == B and B % 2 == 0 and (B // 2) * HW >= 2048:
        bc = B // 2
    return bc


def residual_forward(x_nchw, kernel_params, *, batch_block=None):
    w1, pvec, w2, w3, b3 = kernel_params
    B, Cin, H, W = x_nchw.shape
    HW = H * W
    Cb = w1.shape[0]

    if batch_block is None:
        batch_block = _choose_batch_block(B, H, W, Cin, Cb)
    assert B % batch_block == 0, (B, batch_block)
    chunk = batch_block * HW
    n_lanes = B * HW

    # Channels-major layout so all contractions share one lane-dense N axis.
    x_cm = jnp.transpose(x_nchw, (1, 0, 2, 3)).reshape(Cin, n_lanes)
    masks = _make_tap_masks(H, W, chunk)                      # hoisted masks

    out = pl.pallas_call(
        functools.partial(_residual_kernel, H=H, W=W, Cb=Cb),
        out_shape=jax.ShapeDtypeStruct((Cin, n_lanes), x_cm.dtype),
        grid_spec=pltpu.PrefetchScalarGridSpec(
            num_scalar_prefetch=0,
            grid=(B // batch_block,),
            in_specs=[
                pl.BlockSpec((Cin, chunk), lambda i: (0, i)),   # x
                pl.BlockSpec((8, chunk), lambda i: (0, 0)),     # tap masks
                pl.BlockSpec(w1.shape, lambda i: (0, 0)),       # w1 (bf16)
                pl.BlockSpec(pvec.shape, lambda i: (0, 0)),     # b1,a1,b2,a2
                pl.BlockSpec(w2.shape, lambda i: (0, 0)),       # w2 (bf16)
                pl.BlockSpec(w3.shape, lambda i: (0, 0)),       # w3 (bf16)
                pl.BlockSpec(b3.shape, lambda i: (0, 0)),       # b3
            ],
            out_specs=pl.BlockSpec((Cin, chunk), lambda i: (0, i)),
            scratch_shapes=[pltpu.VMEM((9 * Cb, chunk), jnp.bfloat16)],
        ),
        compiler_params=pltpu.CompilerParams(
            dimension_semantics=("parallel",)),                 # megacore-safe
        input_output_aliases={0: 0},                            # reuse x's HBM
    )(x_cm, masks, w1, pvec, w2, w3, b3)

    return out.reshape(Cin, B, H, W).transpose(1, 0, 2, 3)


# ----------------------------------------------------------------------------
# Deterministic parameter construction (mirrors module __init__ shapes), with
# BatchNorm folded into per-channel scale/bias on the conv out-channel.
# ----------------------------------------------------------------------------
def init_params(key, in_ch, bottleneck, eps=1e-5):
    keys = jax.random.split(key, 17)

    def conv_w(k, cout, cin, kh, kw):
        bound = 1.0 / math.sqrt(cin * kh * kw)
        return jax.random.uniform(k, (cout, cin, kh, kw), jnp.float32, -bound, bound)

    def bn_fold(kg, kb, km, kv, c):
        gamma = jax.random.uniform(kg, (c,), jnp.float32, 0.5, 1.5)
        beta = jax.random.uniform(kb, (c,), jnp.float32, -0.5, 0.5)
        mean = jax.random.uniform(km, (c,), jnp.float32, -0.5, 0.5)
        var = jax.random.uniform(kv, (c,), jnp.float32, 0.5, 1.5)
        scale = gamma / jnp.sqrt(var + eps)
        bias = beta - mean * scale
        return scale, bias

    # conv1: 1x1, in_ch -> bottleneck
    c1 = conv_w(keys[0], bottleneck, in_ch, 1, 1)
    s1, b1 = bn_fold(keys[1], keys[2], keys[3], keys[4], bottleneck)
    a1 = jax.random.uniform(keys[5], (bottleneck,), jnp.float32, 0.05, 0.45)

    # conv2: 3x3, bottleneck -> bottleneck, padding 1
    c2 = conv_w(keys[6], bottleneck, bottleneck, 3, 3)
    s2, b2 = bn_fold(keys[7], keys[8], keys[9], keys[10], bottleneck)
    a2 = jax.random.uniform(keys[11], (bottleneck,), jnp.float32, 0.05, 0.45)

    # conv3: 1x1, bottleneck -> in_ch
    c3 = conv_w(keys[12], in_ch, bottleneck, 1, 1)
    s3, b3 = bn_fold(keys[13], keys[14], keys[15], keys[16], in_ch)

    # Fold BN scale into the out-channel of each OIHW conv weight.
    c1s = c1 * s1[:, None, None, None]
    c2s = c2 * s2[:, None, None, None]
    c3s = c3 * s3[:, None, None, None]

    # Kernel-side matmul weights in (Cout, K) orientation, pre-cast to bf16
    # for the MXU.  im2col row index = (kh*3 + kw)*Cb + cin.
    w1_mat = c1s[:, :, 0, 0].astype(jnp.bfloat16)                     # (Cb, Cin)
    w2_mat = jnp.transpose(c2s, (0, 2, 3, 1)).reshape(
        bottleneck, 9 * bottleneck).astype(jnp.bfloat16)              # (Cb, 9Cb)
    w3_mat = c3s[:, :, 0, 0].astype(jnp.bfloat16)                     # (Cin, Cb)

    # Pack the tiny per-channel vectors into one (Cb, 4) input: [b1,a1,b2,a2].
    pvec = jnp.stack([b1, a1, b2, a2], axis=1).astype(jnp.float32)

    kernel_params = (w1_mat, pvec, w2_mat, w3_mat, b3[:, None])
    ref_params = (c1s, b1, a1, c2s, b2, a2, c3s, b3)
    return kernel_params, ref_params


# ----------------------------------------------------------------------------
# Pure-JAX reference (same folded parameters, NCHW, f32 HIGHEST precision)
# ----------------------------------------------------------------------------
def ref_forward_nchw(x, ref_params):
    c1s, b1, a1, c2s, b2, a2, c3s, b3 = ref_params
    dn = ('NCHW', 'OIHW', 'NCHW')
    prec = lax.Precision.HIGHEST

    def ch(v):
        return v[None, :, None, None]

    y = lax.conv_general_dilated(x, c1s, (1, 1), 'VALID',
                                 dimension_numbers=dn, precision=prec) + ch(b1)
    y = jnp.where(y > 0, y, ch(a1) * y)
    y = lax.conv_general_dilated(y, c2s, (1, 1), ((1, 1), (1, 1)),
                                 dimension_numbers=dn, precision=prec) + ch(b2)
    y = jnp.where(y > 0, y, ch(a2) * y)
    y = lax.conv_general_dilated(y, c3s, (1, 1), 'VALID',
                                 dimension_numbers=dn, precision=prec) + ch(b3)
    return x + y


if __name__ == "__main__":
    B, in_ch, H, W = 2, 4, 16, 16
    bottleneck = 8

    root = jax.random.PRNGKey(0)
    k_param, k_x = jax.random.split(root)
    kernel_params, ref_params = init_params(k_param, in_ch, bottleneck)
    x = jax.random.normal(k_x, (B, in_ch, H, W), jnp.float32)

    ref = jax.block_until_ready(ref_forward_nchw(x, ref_params))

    fwd = jax.jit(residual_forward)
    out = jax.block_until_ready(fwd(x, kernel_params))

    assert out.shape == (B, in_ch, H, W)
    # bf16 MXU operands -> compare against the f32 HIGHEST-precision reference
    # with a correspondingly looser tolerance.
    assert jnp.allclose(out, ref, atol=5e-2, rtol=5e-2), (
        float(jnp.max(jnp.abs(out - ref))))

    print("KERNEL_OK")
</pallas_src>

<mosaic_0001>
module attributes {stable_mosaic.version = 11 : i64} {
  func.func @_residual_kernel(%arg0: i32, %arg1: memref<4x512xf32, #tpu.memory_space<vmem>>, %arg2: memref<8x512xf32, #tpu.memory_space<vmem>>, %arg3: memref<8x4xbf16, #tpu.memory_space<vmem>>, %arg4: memref<8x4xf32, #tpu.memory_space<vmem>>, %arg5: memref<8x72xbf16, #tpu.memory_space<vmem>>, %arg6: memref<4x8xbf16, #tpu.memory_space<vmem>>, %arg7: memref<4x1xf32, #tpu.memory_space<vmem>>, %arg8: memref<4x512xf32, #tpu.memory_space<vmem>>, %arg9: memref<72x512xbf16, #tpu.memory_space<vmem>>) attributes {dimension_semantics = [#tpu.dimension_semantics<parallel>], iteration_bounds = array<i64: 1>, scalar_prefetch = 0 : i64, scratch_operands = 1 : i64, tpu.core_type = #tpu.core_type<tc>, window_params = [{transform_indices = @transform_0, window_bounds = array<i64: 4, 512>}, {pipeline_mode = #tpu.pipeline_mode<synchronous>, transform_indices = @transform_1, window_bounds = array<i64: 8, 512>}, {pipeline_mode = #tpu.pipeline_mode<synchronous>, transform_indices = @transform_2, window_bounds = array<i64: 8, 4>}, {pipeline_mode = #tpu.pipeline_mode<synchronous>, transform_indices = @transform_3, window_bounds = array<i64: 8, 4>}, {pipeline_mode = #tpu.pipeline_mode<synchronous>, transform_indices = @transform_4, window_bounds = array<i64: 8, 72>}, {pipeline_mode = #tpu.pipeline_mode<synchronous>, transform_indices = @transform_5, window_bounds = array<i64: 4, 8>}, {pipeline_mode = #tpu.pipeline_mode<synchronous>, transform_indices = @transform_6, window_bounds = array<i64: 4, 1>}, {transform_indices = @transform_7, window_bounds = array<i64: 4, 512>}]} {
    %c0 = arith.constant 0 : index
    %c0_0 = arith.constant 0 : index
    %0 = vector.load %arg1[%c0, %c0_0] : memref<4x512xf32, #tpu.memory_space<vmem>>, vector<4x512xf32>
    %c0_1 = arith.constant 0 : index
    %c0_2 = arith.constant 0 : index
    %1 = vector.load %arg4[%c0_1, %c0_2] : memref<8x4xf32, #tpu.memory_space<vmem>>, vector<8x1xf32>
    %c0_3 = arith.constant 0 : index
    %c1 = arith.constant 1 : index
    %2 = vector.load %arg4[%c0_3, %c1] : memref<8x4xf32, #tpu.memory_space<vmem>>, vector<8x1xf32>
    %c0_4 = arith.constant 0 : index
    %c2 = arith.constant 2 : index
    %3 = vector.load %arg4[%c0_4, %c2] : memref<8x4xf32, #tpu.memory_space<vmem>>, vector<8x1xf32>
    %c0_5 = arith.constant 0 : index
    %c3 = arith.constant 3 : index
    %4 = vector.load %arg4[%c0_5, %c3] : memref<8x4xf32, #tpu.memory_space<vmem>>, vector<8x1xf32>
    %c0_6 = arith.constant 0 : index
    %c0_7 = arith.constant 0 : index
    %5 = vector.load %arg3[%c0_6, %c0_7] : memref<8x4xbf16, #tpu.memory_space<vmem>>, vector<8x4xbf16>
    %6 = arith.truncf %0 : vector<4x512xf32> to vector<4x512xbf16>
    %cst = arith.constant dense<0.000000e+00> : vector<8x512xf32>
    %7 = tpu.matmul %5, %6, %cst {dimension_numbers = #tpu.dot_dimension_numbers<[1], [0], [0], [1], [0, 0, 1, 1], [], []>} : vector<8x4xbf16>, vector<4x512xbf16>, vector<8x512xf32> -> vector<8x512xf32>
    %8 = vector.broadcast %1 : vector<8x1xf32> to vector<8x512xf32>
    %9 = arith.addf %7, %8 : vector<8x512xf32>
    %cst_8 = arith.constant 0.000000e+00 : f32
    %10 = vector.broadcast %cst_8 : f32 to vector<8x512xf32>
    %11 = arith.cmpf ogt, %9, %10 : vector<8x512xf32>
    %12 = vector.broadcast %2 : vector<8x1xf32> to vector<8x512xf32>
    %13 = arith.mulf %12, %9 : vector<8x512xf32>
    %14 = arith.select %11, %9, %13 : vector<8x512xi1>, vector<8x512xf32>
    %c17_i32 = arith.constant 17 : i32
    %15 = tpu.dynamic_rotate %14 by %c17_i32 dim 1 : vector<8x512xf32>, i32 -> vector<8x512xf32>
    %c0_9 = arith.constant 0 : index
    %c0_10 = arith.constant 0 : index
    %16 = vector.load %arg2[%c0_9, %c0_10] : memref<8x512xf32, #tpu.memory_space<vmem>>, vector<1x512xf32>
    %17 = vector.broadcast %16 : vector<1x512xf32> to vector<8x512xf32>
    %18 = arith.mulf %15, %17 : vector<8x512xf32>
    %19 = arith.truncf %18 : vector<8x512xf32> to vector<8x512xbf16>
    %c0_11 = arith.constant 0 : index
    %c0_12 = arith.constant 0 : index
    %20 = vector.load %arg9[%c0_11, %c0_12] : memref<72x512xbf16, #tpu.memory_space<vmem>>, vector<8x512xbf16>
    tpu.vector_store %arg9[%c0_11, %c0_12], %19 {strides = array<i32>} : memref<72x512xbf16, #tpu.memory_space<vmem>>, vector<8x512xbf16>,
    %c16_i32 = arith.constant 16 : i32
    %21 = tpu.dynamic_rotate %14 by %c16_i32 dim 1 : vector<8x512xf32>, i32 -> vector<8x512xf32>
    %c1_13 = arith.constant 1 : index
    %c0_14 = arith.constant 0 : index
    %22 = vector.load %arg2[%c1_13, %c0_14] : memref<8x512xf32, #tpu.memory_space<vmem>>, vector<1x512xf32>
    %23 = vector.broadcast %22 : vector<1x512xf32> to vector<8x512xf32>
    %24 = arith.mulf %21, %23 : vector<8x512xf32>
    %25 = arith.truncf %24 : vector<8x512xf32> to vector<8x512xbf16>
    %c8 = arith.constant 8 : index
    %c0_15 = arith.constant 0 : index
    %26 = vector.load %arg9[%c8, %c0_15] : memref<72x512xbf16, #tpu.memory_space<vmem>>, vector<8x512xbf16>
    tpu.vector_store %arg9[%c8, %c0_15], %25 {strides = array<i32>} : memref<72x512xbf16, #tpu.memory_space<vmem>>, vector<8x512xbf16>,
    %c15_i32 = arith.constant 15 : i32
    %27 = tpu.dynamic_rotate %14 by %c15_i32 dim 1 : vector<8x512xf32>, i32 -> vector<8x512xf32>
    %c2_16 = arith.constant 2 : index
    %c0_17 = arith.constant 0 : index
    %28 = vector.load %arg2[%c2_16, %c0_17] : memref<8x512xf32, #tpu.memory_space<vmem>>, vector<1x512xf32>
    %29 = vector.broadcast %28 : vector<1x512xf32> to vector<8x512xf32>
    %30 = arith.mulf %27, %29 : vector<8x512xf32>
    %31 = arith.truncf %30 : vector<8x512xf32> to vector<8x512xbf16>
    %c16 = arith.constant 16 : index
    %c0_18 = arith.constant 0 : index
    %32 = vector.load %arg9[%c16, %c0_18] : memref<72x512xbf16, #tpu.memory_space<vmem>>, vector<8x512xbf16>
    tpu.vector_store %arg9[%c16, %c0_18], %31 {strides = array<i32>} : memref<72x512xbf16, #tpu.memory_space<vmem>>, vector<8x512xbf16>,
    %c1_i32 = arith.constant 1 : i32
    %33 = tpu.dynamic_rotate %14 by %c1_i32 dim 1 : vector<8x512xf32>, i32 -> vector<8x512xf32>
    %c3_19 = arith.constant 3 : index
    %c0_20 = arith.constant 0 : index
    %34 = vector.load %arg2[%c3_19, %c0_20] : memref<8x512xf32, #tpu.memory_space<vmem>>, vector<1x512xf32>
    %35 = vector.broadcast %34 : vector<1x512xf32> to vector<8x512xf32>
    %36 = arith.mulf %33, %35 : vector<8x512xf32>
    %37 = arith.truncf %36 : vector<8x512xf32> to vector<8x512xbf16>
    %c24 = arith.constant 24 : index
    %c0_21 = arith.constant 0 : index
    %38 = vector.load %arg9[%c24, %c0_21] : memref<72x512xbf16, #tpu.memory_space<vmem>>, vector<8x512xbf16>
    tpu.vector_store %arg9[%c24, %c0_21], %37 {strides = array<i32>} : memref<72x512xbf16, #tpu.memory_space<vmem>>, vector<8x512xbf16>,
    %39 = arith.truncf %14 : vector<8x512xf32> to vector<8x512xbf16>
    %c32 = arith.constant 32 : index
    %c0_22 = arith.constant 0 : index
    %40 = vector.load %arg9[%c32, %c0_22] : memref<72x512xbf16, #tpu.memory_space<vmem>>, vector<8x512xbf16>
    tpu.vector_store %arg9[%c32, %c0_22], %39 {strides = array<i32>} : memref<72x512xbf16, #tpu.memory_space<vmem>>, vector<8x512xbf16>,
    %c511_i32 = arith.constant 511 : i32
    %41 = tpu.dynamic_rotate %14 by %c511_i32 dim 1 : vector<8x512xf32>, i32 -> vector<8x512xf32>
    %c4 = arith.constant 4 : index
    %c0_23 = arith.constant 0 : index
    %42 = vector.load %arg2[%c4, %c0_23] : memref<8x512xf32, #tpu.memory_space<vmem>>, vector<1x512xf32>
    %43 = vector.broadcast %42 : vector<1x512xf32> to vector<8x512xf32>
    %44 = arith.mulf %41, %43 : vector<8x512xf32>
    %45 = arith.truncf %44 : vector<8x512xf32> to vector<8x512xbf16>
    %c40 = arith.constant 40 : index
    %c0_24 = arith.constant 0 : index
    %46 = vector.load %arg9[%c40, %c0_24] : memref<72x512xbf16, #tpu.memory_space<vmem>>, vector<8x512xbf16>
    tpu.vector_store %arg9[%c40, %c0_24], %45 {strides = array<i32>} : memref<72x512xbf16, #tpu.memory_space<vmem>>, vector<8x512xbf16>,
    %c497_i32 = arith.constant 497 : i32
    %47 = tpu.dynamic_rotate %14 by %c497_i32 dim 1 : vector<8x512xf32>, i32 -> vector<8x512xf32>
    %c5 = arith.constant 5 : index
    %c0_25 = arith.constant 0 : index
    %48 = vector.load %arg2[%c5, %c0_25] : memref<8x512xf32, #tpu.memory_space<vmem>>, vector<1x512xf32>
    %49 = vector.broadcast %48 : vector<1x512xf32> to vector<8x512xf32>
    %50 = arith.mulf %47, %49 : vector<8x512xf32>
    %51 = arith.truncf %50 : vector<8x512xf32> to vector<8x512xbf16>
    %c48 = arith.constant 48 : index
    %c0_26 = arith.constant 0 : index
    %52 = vector.load %arg9[%c48, %c0_26] : memref<72x512xbf16, #tpu.memory_space<vmem>>, vector<8x512xbf16>
    tpu.vector_store %arg9[%c48, %c0_26], %51 {strides = array<i32>} : memref<72x512xbf16, #tpu.memory_space<vmem>>, vector<8x512xbf16>,
    %c496_i32 = arith.constant 496 : i32
    %53 = tpu.dynamic_rotate %14 by %c496_i32 dim 1 : vector<8x512xf32>, i32 -> vector<8x512xf32>
    %c6 = arith.constant 6 : index
    %c0_27 = arith.constant 0 : index
    %54 = vector.load %arg2[%c6, %c0_27] : memref<8x512xf32, #tpu.memory_space<vmem>>, vector<1x512xf32>
    %55 = vector.broadcast %54 : vector<1x512xf32> to vector<8x512xf32>
    %56 = arith.mulf %53, %55 : vector<8x512xf32>
    %57 = arith.truncf %56 : vector<8x512xf32> to vector<8x512xbf16>
    %c56 = arith.constant 56 : index
    %c0_28 = arith.constant 0 : index
    %58 = vector.load %arg9[%c56, %c0_28] : memref<72x512xbf16, #tpu.memory_space<vmem>>, vector<8x512xbf16>
    tpu.vector_store %arg9[%c56, %c0_28], %57 {strides = array<i32>} : memref<72x512xbf16, #tpu.memory_space<vmem>>, vector<8x512xbf16>,
    %c495_i32 = arith.constant 495 : i32
    %59 = tpu.dynamic_rotate %14 by %c495_i32 dim 1 : vector<8x512xf32>, i32 -> vector<8x512xf32>
    %c7 = arith.constant 7 : index
    %c0_29 = arith.constant 0 : index
    %60 = vector.load %arg2[%c7, %c0_29] : memref<8x512xf32, #tpu.memory_space<vmem>>, vector<1x512xf32>
    %61 = vector.broadcast %60 : vector<1x512xf32> to vector<8x512xf32>
    %62 = arith.mulf %59, %61 : vector<8x512xf32>
    %63 = arith.truncf %62 : vector<8x512xf32> to vector<8x512xbf16>
    %c64 = arith.constant 64 : index
    %c0_30 = arith.constant 0 : index
    %64 = vector.load %arg9[%c64, %c0_30] : memref<72x512xbf16, #tpu.memory_space<vmem>>, vector<8x512xbf16>
    tpu.vector_store %arg9[%c64, %c0_30], %63 {strides = array<i32>} : memref<72x512xbf16, #tpu.memory_space<vmem>>, vector<8x512xbf16>,
    %c0_31 = arith.constant 0 : index
    %c0_32 = arith.constant 0 : index
    %65 = vector.load %arg5[%c0_31, %c0_32] : memref<8x72xbf16, #tpu.memory_space<vmem>>, vector<8x72xbf16>
    %c0_33 = arith.constant 0 : index
    %c0_34 = arith.constant 0 : index
    %66 = vector.load %arg9[%c0_33, %c0_34] : memref<72x512xbf16, #tpu.memory_space<vmem>>, vector<72x512xbf16>
    %cst_35 = arith.constant dense<0.000000e+00> : vector<8x512xf32>
    %67 = tpu.matmul %65, %66, %cst_35 {dimension_numbers = #tpu.dot_dimension_numbers<[1], [0], [0], [1], [0, 0, 1, 1], [], []>} : vector<8x72xbf16>, vector<72x512xbf16>, vector<8x512xf32> -> vector<8x512xf32>
    %68 = vector.broadcast %3 : vector<8x1xf32> to vector<8x512xf32>
    %69 = arith.addf %67, %68 : vector<8x512xf32>
    %cst_36 = arith.constant 0.000000e+00 : f32
    %70 = vector.broadcast %cst_36 : f32 to vector<8x512xf32>
    %71 = arith.cmpf ogt, %69, %70 : vector<8x512xf32>
    %72 = vector.broadcast %4 : vector<8x1xf32> to vector<8x512xf32>
    %73 = arith.mulf %72, %69 : vector<8x512xf32>
    %74 = arith.select %71, %69, %73 : vector<8x512xi1>, vector<8x512xf32>
    %c0_37 = arith.constant 0 : index
    %c0_38 = arith.constant 0 : index
    %75 = vector.load %arg6[%c0_37, %c0_38] : memref<4x8xbf16, #tpu.memory_space<vmem>>, vector<4x8xbf16>
    %76 = arith.truncf %74 : vector<8x512xf32> to vector<8x512xbf16>
    %cst_39 = arith.constant dense<0.000000e+00> : vector<4x512xf32>
    %77 = tpu.matmul %75, %76, %cst_39 {dimension_numbers = #tpu.dot_dimension_numbers<[1], [0], [0], [1], [0, 0, 1, 1], [], []>} : vector<4x8xbf16>, vector<8x512xbf16>, vector<4x512xf32> -> vector<4x512xf32>
    %c0_40 = arith.constant 0 : index
    %c0_41 = arith.constant 0 : index
    %78 = vector.load %arg7[%c0_40, %c0_41] : memref<4x1xf32, #tpu.memory_space<vmem>>, vector<4x1xf32>
    %79 = vector.broadcast %78 : vector<4x1xf32> to vector<4x512xf32>
    %80 = arith.addf %77, %79 : vector<4x512xf32>
    %81 = arith.addf %0, %80 : vector<4x512xf32>
    %c0_42 = arith.constant 0 : index
    %c0_43 = arith.constant 0 : index
    %82 = vector.load %arg8[%c0_42, %c0_43] : memref<4x512xf32, #tpu.memory_space<vmem>>, vector<4x512xf32>
    tpu.vector_store %arg8[%c0_42, %c0_43], %81 {strides = array<i32>} : memref<4x512xf32, #tpu.memory_space<vmem>>, vector<4x512xf32>,
    return
  }
  func.func @transform_0(%arg0: i32) -> (i32, i32) {
    %c0_i32 = arith.constant 0 : i32
    %c0_i32_0 = arith.constant 0 : i32
    return %c0_i32, %arg0 : i32, i32
  }
  func.func @transform_1(%arg0: i32) -> (i32, i32) {
    %c0_i32 = arith.constant 0 : i32
    %c0_i32_0 = arith.constant 0 : i32
    %c0_i32_1 = arith.constant 0 : i32
    return %c0_i32, %c0_i32_0 : i32, i32
  }
  func.func @transform_2(%arg0: i32) -> (i32, i32) {
    %c0_i32 = arith.constant 0 : i32
    %c0_i32_0 = arith.constant 0 : i32
    %c0_i32_1 = arith.constant 0 : i32
    return %c0_i32, %c0_i32_0 : i32, i32
  }
  func.func @transform_3(%arg0: i32) -> (i32, i32) {
    %c0_i32 = arith.constant 0 : i32
    %c0_i32_0 = arith.constant 0 : i32
    %c0_i32_1 = arith.constant 0 : i32
    return %c0_i32, %c0_i32_0 : i32, i32
  }
  func.func @transform_4(%arg0: i32) -> (i32, i32) {
    %c0_i32 = arith.constant 0 : i32
    %c0_i32_0 = arith.constant 0 : i32
    %c0_i32_1 = arith.constant 0 : i32
    return %c0_i32, %c0_i32_0 : i32, i32
  }
  func.func @transform_5(%arg0: i32) -> (i32, i32) {
    %c0_i32 = arith.constant 0 : i32
    %c0_i32_0 = arith.constant 0 : i32
    %c0_i32_1 = arith.constant 0 : i32
    return %c0_i32, %c0_i32_0 : i32, i32
  }
  func.func @transform_6(%arg0: i32) -> (i32, i32) {
    %c0_i32 = arith.constant 0 : i32
    %c0_i32_0 = arith.constant 0 : i32
    %c0_i32_1 = arith.constant 0 : i32
    return %c0_i32, %c0_i32_0 : i32, i32
  }
  func.func @transform_7(%arg0: i32) -> (i32, i32) {
    %c0_i32 = arith.constant 0 : i32
    %c0_i32_0 = arith.constant 0 : i32
    return %c0_i32, %arg0 : i32, i32
  }
}

</mosaic_0001>

<bundles_post_ra>
// kernel: residual_forward.1
= control target key start
LH: loop header
LB: loop body
LE: loop exit
PB: predicated region body
PF: predicated region fallthrough
CT: control target
= control target key end

     0   :  { %vm50_vm0 = vcmask 1041408   ;;  %v1594_v2 = vmov 0   ;;  %vm46_vm1 = vcmask 31744   ;;  %v1113_v13 = vmov 1   ;;  %s1116_s8 = smov 15   ;;  %s1117_s9 = smov 1   ;;  %s1586_s0 = inlined_call_operand.vmem [shape: f32[4,512], index: 0, kind: input, shape index: {}, may-alias: {0,7}]   ;;  %s1587_s3 = inlined_call_operand.vmem [shape: f32[8,4], index: 3, kind: input, shape index: {}]   ;;  %s1588_s2 = inlined_call_operand.vmem [shape: bf16[8,4], index: 2, kind: input, shape index: {}]   ;;  %s1589_s1 = inlined_call_operand.vmem [shape: f32[8,512], index: 1, kind: input, shape index: {}]   ;;  %s1590_s4 = inlined_call_operand.vmem [shape: bf16[8,72], index: 4, kind: input, shape index: {}]   ;;  %s1591_s6 = inlined_call_operand.vmem [shape: f32[4,1], index: 6, kind: input, shape index: {}]   ;;  %s1592_s5 = inlined_call_operand.vmem [shape: bf16[4,8], index: 5, kind: input, shape index: {}]   ;;  %s1593_s7 = inlined_call_operand.vmem [shape: f32[4,512], index: 7, kind: output, shape index: {}, may-alias: {0,7}]  }
   0x1   :  { %v1167_v0 = vld [vmem:[%s1586_s0] sm:$0xff]  ;;  %v1172_v1 = vld [vmem:[%s1586_s0 + $0x8] sm:$0xff]  ;;  %95 = vmatprep.mubr.bf16.mxu0 %v1594_v2  ;;  %136 = vmatprep.mubr.bf16.mxu1 %v1594_v2  ;;  %s1118_s10 = smov 127   ;;  %s1119_s11 = smov 113   ;;  %v1122_v36 = vmov 2   ;;  %v1123_v37 = vmov 3   ;;  %v169_v39 = vlaneseq }
   0x2   :  { %v33_v3 = vcombine.high %v1167_v0, %v1167_v0  ;;  %v34_v4 = vcombine.high %v1172_v1, %v1172_v1  ;;  %v37_v5 = vpack.c.bf16 %v1167_v0, %v1167_v0  ;;  %v39_v6 = vpack.c.bf16 %v1172_v1, %v1172_v1  ;;  %1104 = vset.pattern.permute.xlu0 %v1594_v2  ;;  %v1188_v7 = vld [vmem:[%s1587_s3] sm:$0xff]  ;;  %s1115_s3 = smov 16   ;;  %s1120_s12 = smov 112  }
   0x3   :  { %43 = vperm.xlu0 %1104, %v1188_v7   ;;  %v30_v12 = vld [vmem:[%s1588_s2] sm:$0xf]  ;;  %s1114_s2 = smov 17   ;;  %s1121_s13 = smov 111   ;;  %1106 = vset.pattern.permute.xlu1 %v1122_v36  ;;  %v179_v41 = vshrl.u32 %v169_v39, 7  ;;  %v1257_v44 = vand.u32 127, %v169_v39 }
   0x4   :  { %v38_v8 = vpack.c.bf16 %v33_v3, %v33_v3  ;;  %v40_v9 = vpack.c.bf16 %v34_v4, %v34_v4  ;;  %v52_v10 = vsel %vm50_vm0, %v37_v5, 0  ;;  %v58_v11 = vsel %vm50_vm0, %v39_v6, 0  ;;  %v1266_v47 = vld [vmem:[%s1589_s1] ss:$8 sm:$0xf] }
   0x5   :  { %v1259_v45 = vsub.s32 3, %v179_v41  ;;  %v1271_v48 = vld [vmem:[%s1589_s1 + $0x1] ss:$8 sm:$0xf]  ;;  %vm171_vm6 = vcmp.lt.s32.totalorder %v1257_v44, 17  ;;  %vm228_vm7 = vcmp.lt.s32.totalorder %v1257_v44, 16 }
   0x6   :  { %997 = vmatprep.subr.msk.bf16.mxu0 %vm50_vm0, %v38_v8  ;;  %999 = vmatprep.subr.msk.bf16.mxu1 %vm50_vm0, %v40_v9  ;;  %v1303_v6 = vsub.s32 0, %v179_v41  ;;  %v1307_v8 = vsub.s32 1, %v179_v41  ;;  %v1309_v9 = vsub.s32 2, %v179_v41  ;;  %vm286_vm8 = vcmp.lt.s32.totalorder %v1257_v44, 15 }
   0x7   :  { %64 = vmatpush1.bf16.msra.mxu0 %v52_v10  ;;  %105 = vmatpush1.bf16.msra.mxu1 %v58_v11  ;;  %v193_v50 = vrot.slane %v1266_v47, %v1259_v45  ;;  %v251_v51 = vrot.slane %v1271_v48, %v1259_v45  ;;  %v1316_v11 = vld [vmem:[%s1589_s1 + $0x2] ss:$8 sm:$0xf]  ;;  %vm344_vm9 = vcmp.lt.s32.totalorder %v1257_v44, 1  ;;  %vm420_vm10 = vcmp.lt.s32.totalorder %v1257_v44, 127 }
   0x8   :  { %1105 = vset.pattern.permute.xlu0 %v1113_v13  ;;  %v1323_v13 = vld [vmem:[%s1589_s1 + $0x3] ss:$8 sm:$0xf]  ;;  %vm536_vm11 = vcmp.lt.s32.totalorder %v1257_v44, 112  ;;  %vm478_vm12 = vcmp.lt.s32.totalorder %v1257_v44, 113  ;;  %vm594_vm13 = vcmp.lt.s32.totalorder %v1257_v44, 111 }
   0x9   :  { %150 = vperm.xlu0 %1105, %v1188_v7   ;;  %vm761_vm14 = vcmask 1043456   ;;  %v644_v44 = vld [vmem:[%s1590_s4] sm:$0xf]  ;;  %vm757_vm15 = vcmask 588800  }
   0xa   :  { %998 = vmatmul.mubr.msk.bf16.vlgmr.msra.gmra.mrb[0].mxu0 %vm46_vm1, %v30_v12  ;;  %1000 = vmatmul.mubr.msk.bf16.vlgmr.msra.gmra.mrb[0].mxu1 %vm46_vm1, %v30_v12  ;;  %v181_v12 = vrot.slane %v1266_v47, %v1303_v6 }
   0xb   :  { %806 = vmatprep.mubr.bf16.mxu0 %v1594_v2  ;;  %847 = vmatprep.mubr.bf16.mxu1 %v1594_v2 }
   0xd   :  { %1107 = vset.pattern.permute.xlu0 %v1123_v37 }
  0x82   :  { %v44_v14 = vpop.permute.xlu0 %43 }
  0x88   :  { %v151_v15 = vpop.permute.xlu0 %150 }
  0xdd   :  { %v97_v16 = vpop.f32.mrb[0].mxu0  ;;  %v138_v17 = vpop.f32.mrb[0].mxu1 }
  0xde   :  { %v98_v18 = vadd.f32 %v97_v16, %v44_v14  ;;  %v139_v19 = vadd.f32 %v138_v17, %v44_v14  ;;  %v99_v20 = vpop.f32.mrb[1].mxu0  ;;  %v140_v21 = vpop.f32.mrb[1].mxu1  ;;  %v239_v16 = vrot.slane %v1271_v48, %v1303_v6  ;;  %v247_v17 = vrot.slane %v1271_v48, %v1309_v9 }
  0xdf   :  { %v100_v22 = vadd.f32 %v99_v20, %v44_v14  ;;  %v141_v23 = vadd.f32 %v140_v21, %v44_v14  ;;  %v101_v24 = vpop.f32.mrb[2].mxu0  ;;  %v142_v25 = vpop.f32.mrb[2].mxu1  ;;  %v301_v20 = vrot.slane %v1316_v11, %v1307_v8  ;;  %v297_v21 = vrot.slane %v1316_v11, %v1303_v6 }
  0xe0   :  { %vm145_vm2 = vcmp.gt.f32.partialorder %v98_v18, 0.0  ;;  %v153_v26 = vmul.f32 %v151_v15, %v98_v18  ;;  %v102_v27 = vpop.f32.mrb[3].mxu0  ;;  %v143_v28 = vpop.f32.mrb[3].mxu1  ;;  %v155_v30 = vmul.f32 %v151_v15, %v139_v19  ;;  %vm147_vm4 = vcmp.gt.f32.partialorder %v139_v19, 0.0 }
  0xe1   :  { %vm148_vm3 = vcmp.gt.f32.partialorder %v141_v23, 0.0  ;;  %v156_v29 = vmul.f32 %v151_v15, %v141_v23  ;;  %v154_v32 = vmul.f32 %v151_v15, %v100_v22  ;;  %vm146_vm5 = vcmp.gt.f32.partialorder %v100_v22, 0.0  ;;  %v1352_v24 = vld [vmem:[%s1589_s1 + $0x5] ss:$8 sm:$0xf] }
  0xe2   :  { %v1201_v31 = vsel %vm145_vm2, %v98_v18, %v153_v26  ;;  %v1209_v34 = vsel %vm147_vm4, %v139_v19, %v155_v30  ;;  %v243_v15 = vrot.slane %v1271_v48, %v1307_v8  ;;  %v1337_v18 = vld [vmem:[%s1589_s1 + $0x4] ss:$8 sm:$0xf]  ;;  %v359_v25 = vrot.slane %v1323_v13, %v1307_v8 }
  0xe3   :  { %v1203_v33 = vsel %vm148_vm3, %v141_v23, %v156_v29  ;;  %161 = vrot.lane.b32.xlu1 %v1201_v31, %s1114_s2  ;;  %v1211_v35 = vsel %vm146_vm5, %v100_v22, %v154_v32  ;;  %v309_v23 = vrot.slane %v1316_v11, %v1259_v45  ;;  %v355_v26 = vrot.slane %v1323_v13, %v1303_v6 }
  0xe4   :  { %167 = vrot.lane.b32.xlu0 %v1203_v33, %s1114_s2  ;;  %v363_v27 = vrot.slane %v1323_v13, %v1309_v9  ;;  %v367_v29 = vrot.slane %v1323_v13, %v1259_v45  ;;  %v443_v36 = vrot.slane %v1337_v18, %v1259_v45  ;;  %v435_v37 = vrot.slane %v1337_v18, %v1307_v8  ;;  %v1407_v13 = vld [vmem:[%s1589_s1 + $0x7] ss:$8 sm:$0xf] }
  0xe5   :  { %vm883_vm4 = vcmask 64512  }
  0xe7   :  { %165 = vrot.lane.b32.xlu1 %v1209_v34, %s1114_s2 }
  0xe8   :  { %222 = vrot.lane.b32.xlu0 %v1211_v35, %s1115_s3 }
  0xeb   :  { %220 = vrot.lane.b32.xlu1 %v1201_v31, %s1115_s3 }
  0xec   :  { %226 = vrot.lane.b32.xlu0 %v1203_v33, %s1115_s3 }
  0xef   :  { %224 = vrot.lane.b32.xlu1 %v1209_v34, %s1115_s3 }
  0xf0   :  { %280 = vrot.lane.b32.xlu0 %v1211_v35, %s1116_s8 }
  0xf3   :  { %278 = vrot.lane.b32.xlu1 %v1201_v31, %s1116_s8 }
  0xf4   :  { %284 = vrot.lane.b32.xlu0 %v1203_v33, %s1116_s8 }
  0xf7   :  { %282 = vrot.lane.b32.xlu1 %v1209_v34, %s1116_s8 }
  0xf8   :  { %338 = vrot.lane.b32.xlu0 %v1211_v35, %s1117_s9 }
  0xfb   :  { %336 = vrot.lane.b32.xlu1 %v1201_v31, %s1117_s9 }
  0xfc   :  { %342 = vrot.lane.b32.xlu0 %v1203_v33, %s1117_s9 }
  0xff   :  { %340 = vrot.lane.b32.xlu1 %v1209_v34, %s1117_s9 }
 0x100   :  { %414 = vrot.lane.b32.xlu0 %v1211_v35, %s1118_s10 }
 0x103   :  { %412 = vrot.lane.b32.xlu1 %v1201_v31, %s1118_s10 }
 0x104   :  { %418 = vrot.lane.b32.xlu0 %v1203_v33, %s1118_s10 }
 0x107   :  { %416 = vrot.lane.b32.xlu1 %v1209_v34, %s1118_s10 }
 0x108   :  { %472 = vrot.lane.b32.xlu0 %v1211_v35, %s1119_s11 }
 0x10b   :  { %470 = vrot.lane.b32.xlu1 %v1201_v31, %s1119_s11 }
 0x10c   :  { %476 = vrot.lane.b32.xlu0 %v1203_v33, %s1119_s11 }
 0x10f   :  { %474 = vrot.lane.b32.xlu1 %v1209_v34, %s1119_s11 }
 0x110   :  { %530 = vrot.lane.b32.xlu0 %v1211_v35, %s1120_s12 }
 0x113   :  { %163 = vrot.lane.b32.xlu1 %v1211_v35, %s1114_s2 }
 0x114   :  { %534 = vrot.lane.b32.xlu0 %v1203_v33, %s1120_s12 }
 0x117   :  { %528 = vrot.lane.b32.xlu1 %v1201_v31, %s1120_s12 }
 0x118   :  { %588 = vrot.lane.b32.xlu0 %v1211_v35, %s1121_s13 }
 0x11b   :  { %532 = vrot.lane.b32.xlu1 %v1209_v34, %s1120_s12 }
 0x11c   :  { %592 = vrot.lane.b32.xlu0 %v1203_v33, %s1121_s13 }
 0x11f   :  { %586 = vrot.lane.b32.xlu1 %v1201_v31, %s1121_s13 }
 0x120   :  { %861 = vperm.xlu0 %1107, %v1188_v7  }
 0x123   :  { %590 = vrot.lane.b32.xlu1 %v1209_v34, %s1121_s13 }
 0x124   :  { %1109 = vset.pattern.permute.xlu0 %v1594_v2 }
 0x127   :  { %664 = vperm.xlu1 %1106, %v1188_v7  }
 0x12b   :  { %1108 = vset.pattern.permute.xlu1 %v1594_v2 }
 0x155   :  { %v1249_v38 = vpop.permute.xlu1 %161 }
 0x156   :  { %v1251_v40 = vpop.permute.xlu0 %167 }
 0x159   :  { %v1253_v42 = vpop.permute.xlu1 %165 }
 0x15a   :  { %v1255_v43 = vpop.permute.xlu0 %222  ;;  %v172_v52 = vsel %vm171_vm6, %v1253_v42, %v1251_v40 }
 0x15b   :  { %v201_v56 = vmul.f32 %v193_v50, %v172_v52  ;;  %v175_v50 = vsel %vm171_vm6, %v1251_v40, %v1249_v38  ;;  %v189_v40 = vrot.slane %v1266_v47, %v1309_v9 }
 0x15d   :  { %v1261_v46 = vpop.permute.xlu1 %220 }
 0x15e   :  { %v227_v49 = vpop.permute.xlu0 %226 }
 0x15f   :  { %v232_v28 = vsel %vm228_vm7, %v227_v49, %v1261_v46 }
 0x161   :  { %v225_v53 = vpop.permute.xlu1 %224 }
 0x162   :  { %v229_v54 = vsel %vm228_vm7, %v225_v53, %v227_v49  ;;  %v1285_v55 = vpop.permute.xlu0 %280  ;;  %v1384_v49 = vld [vmem:[%s1589_s1 + $0x6] ss:$8 sm:$0xf]  ;;  %v230_v2 = vsel %vm228_vm7, %v1255_v43, %v225_v53 }
 0x163   :  { %v259_v57 = vmul.f32 %v251_v51, %v229_v54  ;;  %v559_v54 = vrot.slane %v1384_v49, %v1259_v45  ;;  %v258_v39 = vmul.f32 %v247_v17, %v230_v2 }
 0x165   :  { %v1287_v58 = vpop.permute.xlu1 %278  ;;  %v1075_v59 = vpack.c.bf16 %v259_v57, %v201_v56  ;;  %v231_v56 = vsel %vm228_vm7, %v1261_v46, %v1255_v43  ;;  %v256_v57 = vmul.f32 %v239_v16, %v232_v28  ;;  %v198_v28 = vmul.f32 %v181_v12, %v175_v50 }
 0x166   :  { %v1289_v60 = vpop.permute.xlu0 %284  ;;  %v289_v46 = vsel %vm286_vm8, %v1287_v58, %v1285_v55  ;;  %v551_v43 = vrot.slane %v1384_v49, %v1307_v8  ;;  %v257_v52 = vmul.f32 %v243_v15, %v231_v56 }
 0x167   :  { %815 = vmatprep.subr.bf16.mxu1 %v1075_v59  ;;  %v185_v59 = vrot.slane %v1266_v47, %v1307_v8  ;;  %v1072_v47 = vpack.c.bf16 %v256_v57, %v198_v28  ;;  %v315_v30 = vmul.f32 %v301_v20, %v289_v46  ;;  %v290_v15 = vsel %vm286_vm8, %v1289_v60, %v1287_v58 }
 0x169   :  { %v1291_v61 = vpop.permute.xlu1 %282 }
 0x16a   :  { %v1293_v62 = vpop.permute.xlu0 %338  ;;  %v287_v56 = vsel %vm286_vm8, %v1291_v61, %v1289_v60 }
 0x16b   :  { %v317_v46 = vmul.f32 %v309_v23, %v287_v56  ;;  %v1596_v23 = vrot.slane %v1316_v11, %v1309_v9 }
 0x16d   :  { %v1295_v63 = vpop.permute.xlu1 %336 }
 0x16e   :  { %v1297_v3 = vpop.permute.xlu0 %342  ;;  %v347_v53 = vsel %vm344_vm9, %v1295_v63, %v1293_v62 }
 0x16f   :  { %v348_v2 = vsel %vm344_vm9, %v1297_v3, %v1295_v63 }
 0x170   :  { %v372_v28 = vmul.f32 %v355_v26, %v348_v2 }
 0x171   :  { %v1299_v4 = vpop.permute.xlu1 %340 }
 0x172   :  { %v1301_v5 = vpop.permute.xlu0 %414  ;;  %v345_v51 = vsel %vm344_vm9, %v1299_v4, %v1297_v3  ;;  %v346_v17 = vsel %vm344_vm9, %v1293_v62, %v1299_v4  ;;  %v288_v62 = vsel %vm286_vm8, %v1285_v55, %v1291_v61  ;;  %v373_v4 = vmul.f32 %v359_v25, %v347_v53 }
 0x173   :  { %v375_v57 = vmul.f32 %v367_v29, %v345_v51  ;;  %v374_v50 = vmul.f32 %v363_v27, %v346_v17  ;;  %v314_v61 = vmul.f32 %v297_v21, %v290_v15  ;;  %v316_v25 = vmul.f32 %v1596_v23, %v288_v62 }
 0x174   :  { %v1597_v21 = vrot.slane %v1337_v18, %v1303_v6 }
 0x175   :  { %v1305_v7 = vpop.permute.xlu1 %412  ;;  %v1079_v27 = vpack.c.bf16 %v375_v57, %v317_v46 }
 0x176   :  { %v1311_v10 = vpop.permute.xlu0 %418 }
 0x177   :  { %v424_v58 = vsel %vm420_vm10, %v1311_v10, %v1305_v7 }
 0x179   :  { %v1325_v14 = vpop.permute.xlu1 %416 }
 0x17a   :  { %v1339_v19 = vpop.permute.xlu0 %472  ;;  %v421_v26 = vsel %vm420_vm10, %v1325_v14, %v1311_v10  ;;  %v609_v10 = vrot.slane %v1407_v13, %v1307_v8 }
 0x17d   :  { %v1369_v32 = vpop.permute.xlu1 %470 }
 0x17e   :  { %v1379_v48 = vpop.permute.xlu0 %476 }
 0x181   :  { %v1416_v16 = vpop.permute.xlu1 %474 }
 0x182   :  { %v531_v41 = vpop.permute.xlu0 %530  ;;  %v480_v53 = vsel %vm478_vm12, %v1339_v19, %v1416_v16 }
 0x185   :  { %v164_v20 = vpop.permute.xlu1 %163 }
 0x186   :  { %v173_v60 = vsel %vm171_vm6, %v164_v20, %v1253_v42  ;;  %v174_v63 = vsel %vm171_vm6, %v1249_v38, %v164_v20  ;;  %v535_v3 = vpop.permute.xlu0 %534  ;;  %v422_v42 = vsel %vm420_vm10, %v1301_v5, %v1325_v14  ;;  %v423_v38 = vsel %vm420_vm10, %v1305_v7, %v1301_v5 }
 0x187   :  { %v199_v29 = vmul.f32 %v185_v59, %v174_v63  ;;  %v200_v51 = vmul.f32 %v189_v40, %v173_v60  ;;  %v451_v20 = vmul.f32 %v443_v36, %v424_v58  ;;  %v449_v59 = vmul.f32 %v435_v37, %v422_v42 }
 0x188   :  { %v1077_v36 = vpack.c.bf16 %v373_v4, %v315_v30  ;;  %v448_v11 = vmul.f32 %v1597_v21, %v423_v38  ;;  %v1078_v14 = vpack.c.bf16 %v374_v50, %v316_v25  ;;  %v1598_v37 = vrot.slane %v1337_v18, %v1309_v9 }
 0x189   :  { %v1074_v12 = vpack.c.bf16 %v258_v39, %v200_v51  ;;  %v529_v22 = vpop.permute.xlu1 %528  ;;  %v1073_v55 = vpack.c.bf16 %v257_v52, %v199_v29  ;;  %v1076_v39 = vpack.c.bf16 %v372_v28, %v314_v61  ;;  %v482_v30 = vsel %vm478_vm12, %v1379_v48, %v1369_v32 }
 0x18a   :  { %v540_v5 = vsel %vm536_vm11, %v535_v3, %v529_v22  ;;  %v589_v7 = vpop.permute.xlu0 %588  ;;  %v450_v52 = vmul.f32 %v1598_v37, %v421_v26  ;;  %v539_v15 = vsel %vm536_vm11, %v529_v22, %v531_v41  ;;  %v1081_v2 = vpack.c.bf16 %v449_v59, %v1211_v35 }
 0x18b   :  { %774 = vmatprep.subr.bf16.mxu0 %v1073_v55  ;;  %816 = vmatpush1.bf16.msra.mxu1 %v1074_v12  ;;  %v567_v12 = vmul.f32 %v559_v54, %v540_v5  ;;  %v1080_v17 = vpack.c.bf16 %v448_v11, %v1201_v31  ;;  %v1599_v54 = vrot.slane %v1352_v24, %v1259_v45  ;;  %v1607_v59 = vmov 0   ;;  %v877_v5 = vld [vmem:[%s1591_s6] sm:$0xf] }
 0x18c   :  { %775 = vmatpush1.bf16.msra.mxu0 %v1072_v47  ;;  %817 = vmatprep.subr.bf16.mxu1 %v1079_v27  ;;  %v1083_v47 = vpack.c.bf16 %v451_v20, %v1203_v33  ;;  %v613_v33 = vrot.slane %v1407_v13, %v1309_v9  ;;  %v479_v58 = vsel %vm478_vm12, %v1416_v16, %v1379_v48 }
 0x18d   :  { %776 = vmatprep.subr.bf16.mxu0 %v1077_v36  ;;  %v533_v40 = vpop.permute.xlu1 %532  ;;  %v509_v57 = vmul.f32 %v1599_v54, %v482_v30  ;;  %v1082_v22 = vpack.c.bf16 %v450_v52, %v1209_v34  ;;  %v481_v35 = vsel %vm478_vm12, %v1369_v32, %v1339_v19  ;;  %v1600_v31 = vrot.slane %v1352_v24, %v1307_v8 }
 0x18e   :  { %v537_v50 = vsel %vm536_vm11, %v533_v40, %v535_v3  ;;  %v538_v18 = vsel %vm536_vm11, %v531_v41, %v533_v40  ;;  %v593_v63 = vpop.permute.xlu0 %592  ;;  %v1602_v16 = vrot.slane %v1384_v49, %v1303_v6  ;;  %v1603_v8 = vrot.slane %v1352_v24, %v1309_v9  ;;  %880 = vperm.xlu1 %1108, %v877_v5  }
 0x18f   :  { %v565_v56 = vmul.f32 %v551_v43, %v538_v18  ;;  %818 = vmatpush1.bf16.msra.mxu1 %v1078_v14  ;;  %v507_v41 = vmul.f32 %v1600_v31, %v480_v53  ;;  %v1601_v43 = vrot.slane %v1384_v49, %v1309_v9  ;;  %v1087_v32 = vpack.c.bf16 %v567_v12, %v509_v57 }
 0x190   :  { %777 = vmatpush1.bf16.msra.mxu0 %v1076_v39  ;;  %819 = vmatprep.subr.bf16.mxu1 %v1083_v47  ;;  %v564_v34 = vmul.f32 %v1602_v16, %v539_v15  ;;  %v508_v62 = vmul.f32 %v1603_v8, %v479_v58  ;;  %v1604_v4 = vrot.slane %v1407_v13, %v1303_v6 }
 0x191   :  { %v566_v60 = vmul.f32 %v1601_v43, %v537_v50  ;;  %778 = vmatprep.subr.bf16.mxu0 %v1081_v2  ;;  %v587_v48 = vpop.permute.xlu1 %586  ;;  %v1605_v51 = vrot.slane %v1407_v13, %v1259_v45  ;;  %v1085_v46 = vpack.c.bf16 %v565_v56, %v507_v41  ;;  %v1606_v28 = vrot.slane %v1352_v24, %v1303_v6  ;;  %v872_v43 = vld [vmem:[%s1592_s5] sm:$0x3] }
 0x192   :  { %v597_v3 = vsel %vm594_vm13, %v587_v48, %v589_v7  ;;  %v598_v19 = vsel %vm594_vm13, %v593_v63, %v587_v48 }
 0x193   :  { %v622_v29 = vmul.f32 %v1604_v4, %v597_v3  ;;  %v625_v49 = vmul.f32 %v1605_v51, %v598_v19  ;;  %820 = vmatpush1.bf16.msra.mxu1 %v1082_v22  ;;  %v506_v42 = vmul.f32 %v1606_v28, %v481_v35  ;;  %v1086_v38 = vpack.c.bf16 %v566_v60, %v508_v62 }
 0x194   :  { %779 = vmatpush1.bf16.msra.mxu0 %v1080_v17  ;;  %821 = vmatprep.subr.bf16.mxu1 %v1087_v32 }
 0x195   :  { %v1091_v20 = vpack.c.bf16 %v625_v49, %v625_v49  ;;  %780 = vmatprep.subr.bf16.mxu0 %v1085_v46  ;;  %v591_v9 = vpop.permute.xlu1 %590  ;;  %v1084_v55 = vpack.c.bf16 %v564_v34, %v506_v42  ;;  %v1088_v13 = vpack.c.bf16 %v622_v29, %v622_v29 }
 0x196   :  { %v595_v61 = vsel %vm594_vm13, %v591_v9, %v593_v63  ;;  %v596_v45 = vsel %vm594_vm13, %v589_v7, %v591_v9 }
 0x197   :  { %v623_v23 = vmul.f32 %v609_v10, %v596_v45  ;;  %v624_v25 = vmul.f32 %v613_v33, %v595_v61  ;;  %822 = vmatpush1.bf16.msra.mxu1 %v1086_v38  ;;  %v763_v26 = vsel %vm761_vm14, %v1088_v13, 0 }
 0x198   :  { %781 = vmatpush1.bf16.msra.mxu0 %v1084_v55  ;;  %1048 = vmatprep.subr.msk.bf16.mxu1 %vm761_vm14, %v1091_v20 }
 0x199   :  { %v1089_v6 = vpack.c.bf16 %v623_v23, %v623_v23  ;;  %v1090_v24 = vpack.c.bf16 %v624_v25, %v624_v25 }
 0x19b   :  { %1046 = vmatprep.subr.msk.bf16.mxu0 %vm761_vm14, %v1089_v6  ;;  %v769_v27 = vsel %vm761_vm14, %v1090_v24, 0 }
 0x19c   :  { %783 = vmatpush1.bf16.msra.mxu0 %v763_v26  ;;  %824 = vmatpush1.bf16.msra.mxu1 %v769_v27 }
 0x19f   :  { %1047 = vmatmul.mubr.msk.bf16.vlgmr.msra.gmra.mrb[4].mxu0 %vm757_vm15, %v644_v44  ;;  %1049 = vmatmul.mubr.msk.bf16.vlgmr.msra.gmra.mrb[4].mxu1 %vm757_vm15, %v644_v44  ;;  %v862_v36 = vpop.permute.xlu0 %861 }
 0x1a0   :  { %931 = vmatprep.mubr.bf16.mxu0 %v1607_v59  ;;  %972 = vmatprep.mubr.bf16.mxu1 %v1607_v59 }
 0x1a6   :  { %v665_v7 = vpop.permute.xlu1 %664 }
 0x20d   :  { %v881_v60 = vpop.permute.xlu1 %880 }
 0x272   :  { %v808_v39 = vpop.f32.mrb[4].mxu0  ;;  %v849_v21 = vpop.f32.mrb[4].mxu1 }
 0x273   :  { %v809_v11 = vadd.f32 %v808_v39, %v665_v7  ;;  %v850_v10 = vadd.f32 %v849_v21, %v665_v7  ;;  %v810_v14 = vpop.f32.mrb[5].mxu0  ;;  %v851_v37 = vpop.f32.mrb[5].mxu1 }
 0x274   :  { %v811_v52 = vadd.f32 %v810_v14, %v665_v7  ;;  %v852_v30 = vadd.f32 %v851_v37, %v665_v7  ;;  %v812_v40 = vpop.f32.mrb[6].mxu0  ;;  %v853_v47 = vpop.f32.mrb[6].mxu1 }
 0x275   :  { %v864_v53 = vmul.f32 %v862_v36, %v809_v11  ;;  %v866_v12 = vmul.f32 %v862_v36, %v850_v10  ;;  %v813_v50 = vpop.f32.mrb[7].mxu0  ;;  %v854_v18 = vpop.f32.mrb[7].mxu1  ;;  %vm856_vm0 = vcmp.gt.f32.partialorder %v809_v11, 0.0  ;;  %vm858_vm1 = vcmp.gt.f32.partialorder %v850_v10, 0.0 }
 0x276   :  { %vm857_vm2 = vcmp.gt.f32.partialorder %v811_v52, 0.0  ;;  %vm859_vm3 = vcmp.gt.f32.partialorder %v852_v30, 0.0  ;;  %v865_v15 = vmul.f32 %v862_v36, %v811_v52  ;;  %v867_v56 = vmul.f32 %v862_v36, %v852_v30 }
 0x277   :  { %v868_v2 = vsel %vm856_vm0, %v809_v11, %v864_v53  ;;  %v870_v33 = vsel %vm858_vm1, %v850_v10, %v866_v12 }
 0x278   :  { %v869_v17 = vsel %vm857_vm2, %v811_v52, %v865_v15  ;;  %v871_v54 = vsel %vm859_vm3, %v852_v30, %v867_v56  ;;  %v873_v57 = vpack.c.bf16 %v868_v2, %v868_v2  ;;  %v875_v58 = vpack.c.bf16 %v870_v33, %v870_v33 }
 0x279   :  { %v874_v22 = vpack.c.bf16 %v869_v17, %v869_v17  ;;  %v876_v35 = vpack.c.bf16 %v871_v54, %v871_v54 }
 0x27a   :  { %v888_v31 = vsel %vm761_vm14, %v873_v57, 0  ;;  %v894_v41 = vsel %vm761_vm14, %v875_v58, 0 }
 0x27b   :  { %1050 = vmatprep.subr.msk.bf16.mxu0 %vm761_vm14, %v874_v22  ;;  %1052 = vmatprep.subr.msk.bf16.mxu1 %vm761_vm14, %v876_v35 }
 0x27c   :  { %900 = vmatpush1.bf16.msra.mxu0 %v888_v31  ;;  %941 = vmatpush1.bf16.msra.mxu1 %v894_v41 }
 0x27f   :  { %1051 = vmatmul.mubr.msk.bf16.vlgmr.msra.gmra.mrb[8].mxu0 %vm883_vm4, %v872_v43  ;;  %1053 = vmatmul.mubr.msk.bf16.vlgmr.msra.gmra.mrb[8].mxu1 %vm883_vm4, %v872_v43 }
 0x352   :  { %v933_v63 = vpop.f32.mrb[8].mxu0  ;;  %v974_v48 = vpop.f32.mrb[8].mxu1 }
 0x353   :  { %v935_v16 = vpop.f32.mrb[9].mxu0  ;;  %v976_v34 = vpop.f32.mrb[9].mxu1  ;;  %v934_v3 = vadd.f32 %v933_v63, %v881_v60  ;;  %v975_v19 = vadd.f32 %v974_v48, %v881_v60 }
 0x354   :  { %v937_v32 = vpop.f32.mrb[10].mxu0  ;;  %v978_v8 = vpop.f32.mrb[10].mxu1  ;;  %v936_v62 = vadd.f32 %v935_v16, %v881_v60  ;;  %v977_v4 = vadd.f32 %v976_v34, %v881_v60 }
 0x355   :  { %v938_v29 = vpop.f32.mrb[11].mxu0  ;;  %v979_v51 = vpop.f32.mrb[11].mxu1 }
 0x356   :  { %v985_v49 = vcombine.low %v934_v3, %v936_v62  ;;  %v986_v46 = vcombine.low %v975_v19, %v977_v4 }
 0x358   :  { %v989_v28 = vadd.f32 %v985_v49, %v1167_v0  ;;  %v990_v42 = vadd.f32 %v986_v46, %v1172_v1 }
 0x35a   :  { %991 = vst [vmem:[%s1593_s7] sm:$0xff] %v989_v28  ;;  %992 = vst [vmem:[%s1593_s7 + $0x8] sm:$0xff] %v990_v42 }

</bundles_post_ra>
